<compile_context>
chip_gen: v6e
topology: v6e:2x2x1
jax: 0.10.0
libtpu: 0.0.40
codegen_flags: <defaults>
</compile_context>

<pallas_src>
import functools

import jax
import jax.numpy as jnp
from jax.experimental import pallas as pl
from jax.experimental.pallas import tpu as pltpu

n_embd = 64
hidden = 4 * n_embd  # 256
dropout = 0.0        # identity in forward


def ffn_kernel(x_ref, w1_ref, b1_ref, w2_ref, b2_ref, o_ref, *, sub, n_sub):
    # x_ref:  (tm, n_embd)     bf16
    # w1_ref: (n_embd, hidden) bf16   b1_ref: (1, hidden) f32
    # w2_ref: (hidden, n_embd) bf16   b2_ref: (1, n_embd) f32
    # o_ref:  (tm, n_embd)     f32
    w1 = w1_ref[...]
    b1 = b1_ref[...]
    w2 = w2_ref[...]
    b2 = b2_ref[...]

    def body(c, carry):
        r = pl.multiple_of(c * sub, sub)
        xb = x_ref[pl.ds(r, sub), :]
        # Linear 1: bf16 MXU matmul, f32 accumulate; bias + ReLU in f32 on the VPU.
        h = jnp.dot(xb, w1, preferred_element_type=jnp.float32) + b1
        h = jnp.maximum(h, 0.0)
        # Linear 2: cast activations to bf16 for the MXU, accumulate in f32.
        y = jnp.dot(h.astype(w2.dtype), w2, preferred_element_type=jnp.float32) + b2
        o_ref[pl.ds(r, sub), :] = y.astype(o_ref.dtype)
        return carry

    jax.lax.fori_loop(0, n_sub, body, 0, unroll=True)


def _round_up(a, b):
    return (a + b - 1) // b * b


def feed_forward(x, w1, b1, w2, b2, *, tm=1024, sub=256):
    """x: (B, T, n_embd) -> (B, T, n_embd). Fused Linear-ReLU-Linear (Dropout p=0)."""
    B, T, C = x.shape
    assert C == n_embd
    rows = B * T

    # --- adaptive tile sizing (>=2 grid steps when the problem allows, for megacore) ---
    sub_eff = min(sub, _round_up(rows, 8))                 # sub-chunk, multiple of 8
    half = _round_up(pl.cdiv(rows, 2), sub_eff)            # ~half the problem, sub-aligned
    tm_eff = _round_up(min(tm, max(sub_eff, half)), sub_eff)
    rows_p = _round_up(rows, tm_eff)                       # padded row count
    n_sub = tm_eff // sub_eff
    grid = rows_p // tm_eff

    # --- operand prep: bf16 streamed input + weights, f32 biases ---
    x2 = x.reshape(rows, C).astype(jnp.bfloat16)
    if rows_p != rows:
        x2 = jnp.pad(x2, ((0, rows_p - rows), (0, 0)))
    w1b = w1.astype(jnp.bfloat16)
    w2b = w2.astype(jnp.bfloat16)
    b1_2 = b1.reshape(1, hidden).astype(jnp.float32)
    b2_2 = b2.reshape(1, n_embd).astype(jnp.float32)

    flops = 2 * rows_p * (n_embd * hidden + hidden * n_embd)
    bytes_accessed = (rows_p * n_embd * (2 + 4)            # x in (bf16) + y out (f32)
                      + 2 * n_embd * hidden * 2            # both weights (bf16)
                      + (hidden + n_embd) * 4)             # biases (f32)

    kernel = functools.partial(ffn_kernel, sub=sub_eff, n_sub=n_sub)

    out2 = pl.pallas_call(
        kernel,
        out_shape=jax.ShapeDtypeStruct((rows_p, n_embd), jnp.float32),
        grid_spec=pltpu.PrefetchScalarGridSpec(
            num_scalar_prefetch=0,
            grid=(grid,),
            in_specs=[
                pl.BlockSpec((tm_eff, n_embd), lambda i: (i, 0)),     # x row tile
                pl.BlockSpec((n_embd, hidden), lambda i: (0, 0)),     # W1 (VMEM-resident)
                pl.BlockSpec((1, hidden), lambda i: (0, 0)),          # b1
                pl.BlockSpec((hidden, n_embd), lambda i: (0, 0)),     # W2 (VMEM-resident)
                pl.BlockSpec((1, n_embd), lambda i: (0, 0)),          # b2
            ],
            out_specs=pl.BlockSpec((tm_eff, n_embd), lambda i: (i, 0)),
        ),
        compiler_params=pltpu.CompilerParams(
            dimension_semantics=("parallel",),
            vmem_limit_bytes=64 * 1024 * 1024),
        cost_estimate=pl.CostEstimate(
            flops=flops, transcendentals=0, bytes_accessed=bytes_accessed),
    )(x2, w1b, b1_2, w2b, b2_2)

    return out2[:rows].reshape(B, T, C).astype(x.dtype)


def init_params(key):
    """Deterministic init mimicking PyTorch nn.Linear (uniform +/- 1/sqrt(fan_in))."""
    k1, k2, k3, k4 = jax.random.split(key, 4)
    bound1 = 1.0 / jnp.sqrt(jnp.float32(n_embd))
    bound2 = 1.0 / jnp.sqrt(jnp.float32(hidden))
    w1 = jax.random.uniform(k1, (n_embd, hidden), jnp.float32, -bound1, bound1)
    b1 = jax.random.uniform(k2, (hidden,), jnp.float32, -bound1, bound1)
    w2 = jax.random.uniform(k3, (hidden, n_embd), jnp.float32, -bound2, bound2)
    b2 = jax.random.uniform(k4, (n_embd,), jnp.float32, -bound2, bound2)
    return w1, b1, w2, b2


if __name__ == "__main__":
    key = jax.random.PRNGKey(0)
    kx, kp, kx2 = jax.random.split(key, 3)

    B, T = 2, 8
    x = jax.random.normal(kx, (B, T, n_embd), jnp.float32)
    w1, b1, w2, b2 = init_params(kp)

    out = jax.block_until_ready(feed_forward(x, w1, b1, w2, b2))
    assert out.shape == (B, T, n_embd)

    # Reference with the same bf16-matmul / f32-accumulate recipe (tight tolerance).
    def ref_bf16(xx):
        xb = xx.reshape(-1, n_embd).astype(jnp.bfloat16)
        h = jnp.dot(xb, w1.astype(jnp.bfloat16), preferred_element_type=jnp.float32) + b1
        h = jnp.maximum(h, 0.0)
        y = jnp.dot(h.astype(jnp.bfloat16), w2.astype(jnp.bfloat16),
                    preferred_element_type=jnp.float32) + b2
        return y.reshape(xx.shape)

    # Pure f32 reference (module semantics; loose tolerance due to bf16 matmuls).
    def ref_f32(xx):
        return jnp.maximum(xx @ w1 + b1, 0.0) @ w2 + b2

    assert jnp.allclose(out, ref_bf16(x), atol=2e-3, rtol=2e-3)
    assert jnp.allclose(out, ref_f32(x), atol=5e-2, rtol=5e-2)

    # Second shape: rows (3*37=111) not a multiple of 8 -> exercises the padding path.
    B2, T2 = 3, 37
    x_odd = jax.random.normal(kx2, (B2, T2, n_embd), jnp.float32)
    out_odd = jax.block_until_ready(feed_forward(x_odd, w1, b1, w2, b2))
    assert out_odd.shape == (B2, T2, n_embd)
    assert jnp.allclose(out_odd, ref_bf16(x_odd), atol=2e-3, rtol=2e-3)

    print("KERNEL_OK")
</pallas_src>

<mosaic_0001>
module attributes {stable_mosaic.version = 11 : i64} {
  func.func @ffn_kernel(%arg0: i32, %arg1: memref<16x64xbf16, #tpu.memory_space<vmem>>, %arg2: memref<64x256xbf16, #tpu.memory_space<vmem>>, %arg3: memref<1x256xf32, #tpu.memory_space<vmem>>, %arg4: memref<256x64xbf16, #tpu.memory_space<vmem>>, %arg5: memref<1x64xf32, #tpu.memory_space<vmem>>, %arg6: memref<16x64xf32, #tpu.memory_space<vmem>>) attributes {dimension_semantics = [#tpu.dimension_semantics<parallel>], iteration_bounds = array<i64: 1>, scalar_prefetch = 0 : i64, scratch_operands = 0 : i64, tpu.core_type = #tpu.core_type<tc>, window_params = [{transform_indices = @transform_0, window_bounds = array<i64: 16, 64>}, {pipeline_mode = #tpu.pipeline_mode<synchronous>, transform_indices = @transform_1, window_bounds = array<i64: 64, 256>}, {pipeline_mode = #tpu.pipeline_mode<synchronous>, transform_indices = @transform_2, window_bounds = array<i64: 1, 256>}, {pipeline_mode = #tpu.pipeline_mode<synchronous>, transform_indices = @transform_3, window_bounds = array<i64: 256, 64>}, {pipeline_mode = #tpu.pipeline_mode<synchronous>, transform_indices = @transform_4, window_bounds = array<i64: 1, 64>}, {transform_indices = @transform_5, window_bounds = array<i64: 16, 64>}]} {
    %c0 = arith.constant 0 : index
    %c0_0 = arith.constant 0 : index
    %0 = vector.load %arg2[%c0, %c0_0] : memref<64x256xbf16, #tpu.memory_space<vmem>>, vector<64x256xbf16>
    %c0_1 = arith.constant 0 : index
    %c0_2 = arith.constant 0 : index
    %1 = vector.load %arg3[%c0_1, %c0_2] : memref<1x256xf32, #tpu.memory_space<vmem>>, vector<1x256xf32>
    %c0_3 = arith.constant 0 : index
    %c0_4 = arith.constant 0 : index
    %2 = vector.load %arg4[%c0_3, %c0_4] : memref<256x64xbf16, #tpu.memory_space<vmem>>, vector<256x64xbf16>
    %c0_5 = arith.constant 0 : index
    %c0_6 = arith.constant 0 : index
    %3 = vector.load %arg5[%c0_5, %c0_6] : memref<1x64xf32, #tpu.memory_space<vmem>>, vector<1x64xf32>
    %c0_i32 = arith.constant 0 : i32
    %c16_i32 = arith.constant 16 : i32
    %4 = arith.muli %c0_i32, %c16_i32 : i32
    %5 = tpu.assume_multiple %4, 16 : i32
    %6 = arith.index_cast %5 : i32 to index
    %c0_7 = arith.constant 0 : index
    %7 = vector.load %arg1[%6, %c0_7] : memref<16x64xbf16, #tpu.memory_space<vmem>>, vector<16x64xbf16>
    %cst = arith.constant dense<0.000000e+00> : vector<16x256xf32>
    %8 = tpu.matmul %7, %0, %cst {dimension_numbers = #tpu.dot_dimension_numbers<[1], [0], [0], [1], [0, 0, 1, 1], [], []>} : vector<16x64xbf16>, vector<64x256xbf16>, vector<16x256xf32> -> vector<16x256xf32>
    %9 = vector.broadcast %1 : vector<1x256xf32> to vector<16x256xf32>
    %10 = arith.addf %8, %9 : vector<16x256xf32>
    %cst_8 = arith.constant 0.000000e+00 : f32
    %11 = vector.broadcast %cst_8 : f32 to vector<16x256xf32>
    %12 = arith.maximumf %10, %11 : vector<16x256xf32>
    %13 = arith.truncf %12 : vector<16x256xf32> to vector<16x256xbf16>
    %cst_9 = arith.constant dense<0.000000e+00> : vector<16x64xf32>
    %14 = tpu.matmul %13, %2, %cst_9 {dimension_numbers = #tpu.dot_dimension_numbers<[1], [0], [0], [1], [0, 0, 1, 1], [], []>} : vector<16x256xbf16>, vector<256x64xbf16>, vector<16x64xf32> -> vector<16x64xf32>
    %15 = vector.broadcast %3 : vector<1x64xf32> to vector<16x64xf32>
    %16 = arith.addf %14, %15 : vector<16x64xf32>
    %17 = arith.index_cast %5 : i32 to index
    %c0_10 = arith.constant 0 : index
    %18 = vector.load %arg6[%17, %c0_10] : memref<16x64xf32, #tpu.memory_space<vmem>>, vector<16x64xf32>
    tpu.vector_store %arg6[%17, %c0_10], %16 {strides = array<i32>} : memref<16x64xf32, #tpu.memory_space<vmem>>, vector<16x64xf32>,
    %c1_i32 = arith.constant 1 : i32
    return
  }
  func.func @transform_0(%arg0: i32) -> (i32, i32) {
    %c0_i32 = arith.constant 0 : i32
    %c0_i32_0 = arith.constant 0 : i32
    return %arg0, %c0_i32 : i32, i32
  }
  func.func @transform_1(%arg0: i32) -> (i32, i32) {
    %c0_i32 = arith.constant 0 : i32
    %c0_i32_0 = arith.constant 0 : i32
    %c0_i32_1 = arith.constant 0 : i32
    return %c0_i32, %c0_i32_0 : i32, i32
  }
  func.func @transform_2(%arg0: i32) -> (i32, i32) {
    %c0_i32 = arith.constant 0 : i32
    %c0_i32_0 = arith.constant 0 : i32
    %c0_i32_1 = arith.constant 0 : i32
    return %c0_i32, %c0_i32_0 : i32, i32
  }
  func.func @transform_3(%arg0: i32) -> (i32, i32) {
    %c0_i32 = arith.constant 0 : i32
    %c0_i32_0 = arith.constant 0 : i32
    %c0_i32_1 = arith.constant 0 : i32
    return %c0_i32, %c0_i32_0 : i32, i32
  }
  func.func @transform_4(%arg0: i32) -> (i32, i32) {
    %c0_i32 = arith.constant 0 : i32
    %c0_i32_0 = arith.constant 0 : i32
    %c0_i32_1 = arith.constant 0 : i32
    return %c0_i32, %c0_i32_0 : i32, i32
  }
  func.func @transform_5(%arg0: i32) -> (i32, i32) {
    %c0_i32 = arith.constant 0 : i32
    %c0_i32_0 = arith.constant 0 : i32
    return %arg0, %c0_i32 : i32, i32
  }
}

</mosaic_0001>

<bundles_post_ra>
// kernel: tpu_custom_call.1
= control target key start
LH: loop header
LB: loop body
LE: loop exit
PB: predicated region body
PF: predicated region fallthrough
CT: control target
= control target key end

     0   :  { %v440_v2 = vmov 0   ;;  %vm122_vm0 = vcmask 523264   ;;  %s561_s0 = inlined_call_operand.vmem [shape: bf16[16,64], index: 0, kind: input, shape index: {}]   ;;  %s562_s1 = inlined_call_operand.vmem [shape: bf16[64,256], index: 1, kind: input, shape index: {}]   ;;  %s563_s2 = inlined_call_operand.vmem [shape: f32[1,256], index: 2, kind: input, shape index: {}]   ;;  %s564_s3 = inlined_call_operand.vmem [shape: bf16[256,64], index: 3, kind: input, shape index: {}]   ;;  %s565_s4 = inlined_call_operand.vmem [shape: f32[1,64], index: 4, kind: input, shape index: {}]   ;;  %s566_s5 = inlined_call_operand.hbm [shape: f32[16,64], index: 5, kind: output, shape index: {}]  }
   0x1   :  { %v389_v0 = vld [vmem:[%s562_s1 + $0x34] ss:$8 sps:$4 sm:$0xff]   ;;  %v391_v1 = vld [vmem:[%s562_s1 + $0x30] ss:$8 sps:$4 sm:$0xff]   ;;  %158 = vmatprep.mubr.bf16.mxu0 %v440_v2  ;;  %v392_v3 = vld [vmem:[%s562_s1 + $0x24] ss:$8 sps:$4 sm:$0xff]  }
   0x2   :  { %134 = vmatprep.subr.bf16.mxu0 %v389_v0  ;;  %v394_v4 = vld [vmem:[%s562_s1 + $0x20] ss:$8 sps:$4 sm:$0xff]   ;;  %v395_v5 = vld [vmem:[%s562_s1 + $0x14] ss:$8 sps:$4 sm:$0xff]   ;;  %v397_v6 = vld [vmem:[%s562_s1 + $0x10] ss:$8 sps:$4 sm:$0xff]  }
   0x3   :  { %135 = vmatpush1.bf16.msra.mxu0 %v391_v1  ;;  %v398_v7 = vld [vmem:[%s562_s1 + $0x4] ss:$8 sps:$4 sm:$0xff]   ;;  %v402_v8 = vld [vmem:[%s564_s3 + $0x78] sm:$0xff]   ;;  %v400_v10 = vld [vmem:[%s562_s1] ss:$8 sps:$4 sm:$0xff]  }
   0x4   :  { %136 = vmatprep.subr.bf16.mxu0 %v392_v3  ;;  %v403_v9 = vld [vmem:[%s564_s3 + $0x38] sm:$0xff]   ;;  %363 = vmatprep.subr.bf16.mxu1 %v402_v8  ;;  %v404_v11 = vld [vmem:[%s564_s3 + $0x70] sm:$0xff]   ;;  %v406_v13 = vld [vmem:[%s564_s3 + $0x68] sm:$0xff]  }
   0x5   :  { %364 = vmatpush3.bf16.msra.mxu1 %v403_v9  ;;  %v405_v12 = vld [vmem:[%s564_s3 + $0x30] sm:$0xff]   ;;  %v401_v14 = vld [vmem:[%s561_s0] sm:$0xff]   ;;  %v407_v15 = vld [vmem:[%s564_s3 + $0x28] sm:$0xff]  }
   0x6   :  { %365 = vmatprep.subr.bf16.mxu1 %v404_v11  ;;  %v408_v16 = vld [vmem:[%s564_s3 + $0x60] sm:$0xff]   ;;  %v410_v18 = vld [vmem:[%s564_s3 + $0x58] sm:$0xff]  }
   0x7   :  { %137 = vmatpush1.bf16.msra.mxu0 %v394_v4  ;;  %v409_v17 = vld [vmem:[%s564_s3 + $0x20] sm:$0xff]  }
   0x8   :  { %138 = vmatprep.subr.bf16.mxu0 %v395_v5 }
   0x9   :  { %366 = vmatpush3.bf16.msra.mxu1 %v405_v12 }
   0xa   :  { %367 = vmatprep.subr.bf16.mxu1 %v406_v13 }
   0xb   :  { %139 = vmatpush1.bf16.msra.mxu0 %v397_v6 }
   0xc   :  { %140 = vmatprep.subr.bf16.mxu0 %v398_v7 }
   0xd   :  { %368 = vmatpush3.bf16.msra.mxu1 %v407_v15 }
   0xe   :  { %369 = vmatprep.subr.bf16.mxu1 %v408_v16 }
   0xf   :  { %141 = vmatpush1.bf16.msra.mxu0 %v400_v10 }
  0x12   :  { %345 = vmatmul.mubr.msk.bf16.vlgmr.msra.gmra.mxu0 %vm122_vm0, %v401_v14 }
  0x13   :  { %10 = vsyncpa [#allocation3], 0  ;;  %370 = vmatpush3.bf16.msra.mxu1 %v409_v17  ;;  %v411_v19 = vld [vmem:[%s564_s3 + $0x18] sm:$0xff]   ;;  %v412_v20 = vld [vmem:[%s564_s3 + $0x50] sm:$0xff]   ;;  %v67_v26 = vlaneseq  ;;  %s441_s18 = smov [#allocation2]  }
  0x14   :  { %371 = vmatprep.subr.bf16.mxu1 %v410_v18  ;;  %v413_v21 = vld [vmem:[%s564_s3 + $0x10] sm:$0xff]   ;;  %v414_v22 = vld [vmem:[%s564_s3 + $0x48] sm:$0xff]   ;;  %v416_v24 = vld [vmem:[%s564_s3 + $0x40] sm:$0xff]   ;;  %s325_s19 = sshll.u32 %s441_s18, 4  ;;  %s326_s19 = int_to_ptr.vmem [resolvable:$true] %s325_s19 }
  0x15   :  { %v415_v23 = vld [vmem:[%s564_s3 + $0x8] sm:$0xff]   ;;  %v417_v25 = vld [vmem:[%s564_s3] sm:$0xff]   ;;  %v68_v27 = vshrl.u32 %v67_v26, 7  ;;  %s418_s20 = scalar_lea.vmem %s326_s19, 256  ;;  %p423_p1 = scmp.lt.s32.totalorder %s326_s19, %s326_s19 }
  0x16   :  { %v30_v30 = vld [vmem:[%s563_s2] sm:$0x3]  ;;  %p419_p0 = scmp.ne.s32.totalorder %s326_s19, %s418_s20  ;;  %p424_p2 = scmp.lt.s32.totalorder %s418_s20, %s418_s20 }
  0x17   :  { %372 = vmatpush3.bf16.msra.mxu1 %v411_v19  ;;  %v73_v28 = vsub.s32 1, %v68_v27  ;;  %v69_v29 = vsub.s32 0, %v68_v27  ;;  %v346_v48 = vld [vmem:[%s565_s4] ss:$0 sm:$0xff] }
  0x18   :  { %373 = vmatprep.subr.bf16.mxu1 %v412_v20  ;;  %p425_p3 = por %p424_p2, %p423_p1 }
  0x19   :  { %v74_v32 = vrot.slane %v30_v30, %v73_v28  ;;  %v70_v33 = vrot.slane %v30_v30, %v69_v29 }
  0x1a   :  { %p426_p4 = pnand %p425_p3, %p419_p0 }
  0x1b   :  { %374 = vmatpush3.bf16.msra.mxu1 %v413_v21 }
  0x1c   :  { %375 = vmatprep.subr.bf16.mxu1 %v414_v22 }
  0x1f   :  { %376 = vmatpush3.bf16.msra.mxu1 %v415_v23 }
  0x20   :  { %377 = vmatprep.subr.bf16.mxu1 %v416_v24 }
  0x23   :  { %378 = vmatpush3.bf16.msra.mxu1 %v417_v25 }
  0xd2   :  { %v160_v31 = vpop.f32.mrf.mxu0 }
  0xd3   :  { %v161_v38 = vadd.f32 %v160_v31, %v70_v33 }
  0xd4   :  { %v162_v34 = vpop.f32.mrf.mxu0 }
  0xd5   :  { %v163_v36 = vadd.f32 %v162_v34, %v74_v32  ;;  %v169_v44 = vmax.f32 %v161_v38, 0.0 }
  0xd6   :  { %v164_v35 = vpop.f32.mrf.mxu0 }
  0xd7   :  { %v165_v37 = vadd.f32 %v164_v35, %v70_v33  ;;  %v170_v42 = vmax.f32 %v163_v36, 0.0 }
  0xd8   :  { %v166_v39 = vpop.f32.mrf.mxu0 }
  0xd9   :  { %v167_v40 = vadd.f32 %v166_v39, %v74_v32  ;;  %v171_v41 = vmax.f32 %v165_v37, 0.0 }
  0xdb   :  { %v172_v43 = vmax.f32 %v167_v40, 0.0  ;;  %v173_v46 = vpack.c.bf16 %v171_v41, %v169_v44 }
  0xdd   :  { %v174_v45 = vpack.c.bf16 %v172_v43, %v170_v42 }
  0xdf   :  { %309 = vmatprep.mubr.bf16.mxu1 %v174_v45 }
  0xe0   :  { %310 = vmatmul.mubr.bf16.vlgmr.msra.gmra.mxu1 %v173_v46 }
 0x1a0   :  { %v379_v47 = vpop.f32.mrf.mxu1 }
 0x1a2   :  { %v380_v49 = vpop.f32.mrf.mxu1 }
 0x1a3   :  { %v381_v50 = vadd.f32 %v380_v49, %v379_v47 }
 0x1a4   :  { %v382_v51 = vpop.f32.mrf.mxu1 }
 0x1a5   :  { %v312_v52 = vadd.f32 %v381_v50, %v346_v48 }
 0x1a6   :  { %v383_v53 = vpop.f32.mrf.mxu1 }
 0x1a7   :  { %318 = vst.msk [vmem:[#allocation2] sm:$0xff] %vm122_vm0, %v312_v52  ;;  %v384_v54 = vadd.f32 %v383_v53, %v382_v51 }
 0x1a9   :  { %v315_v55 = vadd.f32 %v384_v54, %v346_v48 }
 0x1ab   :  { %319 = vst.msk [vmem:[#allocation2 + $0x8] sm:$0xff] %vm122_vm0, %v315_v55 }
 0x1ac   :  { %429 = shalt.err (!%p426_p4)
}
 0x1ad   :  { %s442_s4 = smov 128   ;;  %s443_s1 = smov 8  }
 0x1ae   :  { %331 = dma.vmem_to_hbm [thread:$0]  %s326_s19, 256, %s566_s5, [#allocation3], %s442_s4, %s442_s4, %s443_s1  }
 0x1af   :  { %438 = dma.done.wait [#allocation3], 256  }
 0x1b0   :  { %439 = vsyncadd [#allocation3], 4294967040 }
 0x1b1   :  { %335 = vsyncpa [#allocation3], 1 }

</bundles_post_ra>
